<compile_context>
chip_gen: v5e
topology: v5e:2x2
jax: 0.10.0
libtpu: 0.0.40
codegen_flags: <defaults>
</compile_context>

<pallas_src>
import jax
import jax.numpy as jnp
from jax.experimental import pallas as pl
from jax.experimental.pallas import tpu as pltpu

STATE_DIM = 8
ACTION_DIM = 4
HIDDEN_NUM = 32
HEAD_DIM = 2 * ACTION_DIM          # fused mean || log_std head width (8)
BATCH = 2

LOG_STD_MIN = -20.0
LOG_STD_MAX = 2.0
INIT_W = 0.003

# ---- packed-parameter layout: one (PACK_ROWS, 32) f32 buffer, (out, in) ----
R_W1 = 0                           # rows [  0, 32): w1 (32 out, 8 in) in lanes 0:8
R_W2 = R_W1 + HIDDEN_NUM           # rows [ 32, 64): w2 (32, 32)
R_W3 = R_W2 + HIDDEN_NUM           # rows [ 64, 96): w3 (32, 32)
R_WH = R_W3 + HIDDEN_NUM           # rows [ 96,104): fused head weight (8, 32)
R_B = R_WH + HEAD_DIM              # rows [104,136): bias block
                                   #   col0 = b1, col1 = b2, col2 = b3,
                                   #   col3[0:8] = fused head bias
PACK_ROWS = R_B + HIDDEN_NUM       # 136 rows (multiple of 8)

MIN_LANE_TILE = 128                # minimum (lane) batch padding
MAX_BATCH_TILE = 512               # lane tile for large rollout batches


def _next_pow2(n):
    return 1 << (max(int(n), 1) - 1).bit_length()


def _policy_kernel(xT_ref, p_ref, out_ref):
    """One batch tile: y^T = W @ x^T through the fused 4-layer MLP."""
    xT = xT_ref[...]                                          # (STATE_DIM, bt)

    w1 = p_ref[R_W1:R_W1 + HIDDEN_NUM, :STATE_DIM]            # (32, 8)
    b1 = p_ref[R_B:R_B + HIDDEN_NUM, 0:1]                     # (32, 1)
    h = jnp.maximum(
        jnp.dot(w1, xT, preferred_element_type=jnp.float32) + b1, 0.0)

    w2 = p_ref[R_W2:R_W2 + HIDDEN_NUM, :]                     # (32, 32)
    b2 = p_ref[R_B:R_B + HIDDEN_NUM, 1:2]
    h = jnp.maximum(
        jnp.dot(w2, h, preferred_element_type=jnp.float32) + b2, 0.0)

    w3 = p_ref[R_W3:R_W3 + HIDDEN_NUM, :]                     # (32, 32)
    b3 = p_ref[R_B:R_B + HIDDEN_NUM, 2:3]
    h = jnp.maximum(
        jnp.dot(w3, h, preferred_element_type=jnp.float32) + b3, 0.0)

    # Fused head: sublanes [0,4) = mean, [4,8) = log_std.
    wh = p_ref[R_WH:R_WH + HEAD_DIM, :]                       # (8, 32)
    bh = p_ref[R_B:R_B + HEAD_DIM, 3:4]                       # (8, 1)
    head = jnp.dot(wh, h, preferred_element_type=jnp.float32) + bh  # (8, bt)

    # Clip only the log_std sublanes via per-row bounds (mean rows use +/-inf,
    # so the max/min are identity there).  Two full-lane-width VPU ops total.
    row = jax.lax.broadcasted_iota(jnp.int32, (HEAD_DIM, 1), 0)
    lo = jnp.where(row >= ACTION_DIM, LOG_STD_MIN, -jnp.inf).astype(jnp.float32)
    hi = jnp.where(row >= ACTION_DIM, LOG_STD_MAX, jnp.inf).astype(jnp.float32)
    out_ref[...] = jnp.minimum(jnp.maximum(head, lo), hi)     # one lane-dense store


@jax.jit
def policy_forward(state, packed_params):
    """Pallas forward pass of PolicyNetworkBasic. Returns (mean, log_std)."""
    B = state.shape[0]
    # Bucket padded batch to a power of two (min one full 128-lane tile) so a
    # rollout loop with varying B reuses a small set of compiled kernels.
    b_pad = max(MIN_LANE_TILE, _next_pow2(B))
    b_tile = min(b_pad, MAX_BATCH_TILE)
    grid = (b_pad // b_tile,)

    xT = jnp.pad(state, ((0, b_pad - B), (0, 0))).T           # (STATE_DIM, b_pad)

    out = pl.pallas_call(
        _policy_kernel,
        out_shape=jax.ShapeDtypeStruct((HEAD_DIM, b_pad), jnp.float32),
        grid_spec=pltpu.PrefetchScalarGridSpec(
            num_scalar_prefetch=0,
            grid=grid,
            in_specs=[
                pl.BlockSpec((STATE_DIM, b_tile), lambda i: (0, i)),
                pl.BlockSpec((PACK_ROWS, HIDDEN_NUM), lambda i: (0, 0)),
            ],
            out_specs=pl.BlockSpec((HEAD_DIM, b_tile), lambda i: (0, i)),
        ),
        compiler_params=pltpu.CompilerParams(
            dimension_semantics=("parallel",)),
    )(xT, packed_params)

    mean = out[:ACTION_DIM, :B].T
    log_std = out[ACTION_DIM:HEAD_DIM, :B].T
    return mean, log_std


def init_params(key):
    """Deterministic init matching the PyTorch module (weights as (out, in)).

    linear1/2/3: PyTorch default init -> U(-1/sqrt(fan_in), 1/sqrt(fan_in)).
    mean/log_std heads: U(-0.003, 0.003) as in __init__.
    """
    keys = jax.random.split(key, 10)

    def uniform(k, shape, bound):
        return jax.random.uniform(k, shape, jnp.float32, -bound, bound)

    b_in = 1.0 / jnp.sqrt(float(STATE_DIM))
    b_h = 1.0 / jnp.sqrt(float(HIDDEN_NUM))

    w1 = uniform(keys[0], (HIDDEN_NUM, STATE_DIM), b_in)
    b1 = uniform(keys[1], (HIDDEN_NUM,), b_in)
    w2 = uniform(keys[2], (HIDDEN_NUM, HIDDEN_NUM), b_h)
    b2 = uniform(keys[3], (HIDDEN_NUM,), b_h)
    w3 = uniform(keys[4], (HIDDEN_NUM, HIDDEN_NUM), b_h)
    b3 = uniform(keys[5], (HIDDEN_NUM,), b_h)
    wm = uniform(keys[6], (ACTION_DIM, HIDDEN_NUM), INIT_W)
    bm = uniform(keys[7], (ACTION_DIM,), INIT_W)
    ws = uniform(keys[8], (ACTION_DIM, HIDDEN_NUM), INIT_W)
    bs = uniform(keys[9], (ACTION_DIM,), INIT_W)
    return (w1, b1, w2, b2, w3, b3, wm, bm, ws, bs)


def pack_params(params):
    """Pack all 10 tensors into one (PACK_ROWS, 32) f32 buffer (done once)."""
    w1, b1, w2, b2, w3, b3, wm, bm, ws, bs = params
    packed = jnp.zeros((PACK_ROWS, HIDDEN_NUM), jnp.float32)
    packed = packed.at[R_W1:R_W1 + HIDDEN_NUM, :STATE_DIM].set(w1)
    packed = packed.at[R_W2:R_W2 + HIDDEN_NUM, :].set(w2)
    packed = packed.at[R_W3:R_W3 + HIDDEN_NUM, :].set(w3)
    packed = packed.at[R_WH:R_WH + ACTION_DIM, :].set(wm)
    packed = packed.at[R_WH + ACTION_DIM:R_WH + HEAD_DIM, :].set(ws)
    packed = packed.at[R_B:R_B + HIDDEN_NUM, 0].set(b1)
    packed = packed.at[R_B:R_B + HIDDEN_NUM, 1].set(b2)
    packed = packed.at[R_B:R_B + HIDDEN_NUM, 2].set(b3)
    packed = packed.at[R_B:R_B + ACTION_DIM, 3].set(bm)
    packed = packed.at[R_B + ACTION_DIM:R_B + HEAD_DIM, 3].set(bs)
    assert packed.shape == (PACK_ROWS, HIDDEN_NUM)
    return packed


def reference_forward(state, params):
    """Pure-JAX reference for correctness check (mirrors PyTorch forward)."""
    w1, b1, w2, b2, w3, b3, wm, bm, ws, bs = params
    h = jax.nn.relu(state @ w1.T + b1)
    h = jax.nn.relu(h @ w2.T + b2)
    h = jax.nn.relu(h @ w3.T + b3)
    mean = h @ wm.T + bm
    log_std = jnp.clip(h @ ws.T + bs, LOG_STD_MIN, LOG_STD_MAX)
    return mean, log_std


if __name__ == "__main__":
    key = jax.random.PRNGKey(0)
    pkey, skey = jax.random.split(key)

    params = init_params(pkey)
    packed = pack_params(params)

    # Small batch (pads to one 128-lane tile, single grid step).
    state = jax.random.normal(skey, (BATCH, STATE_DIM), jnp.float32)
    mean, log_std = policy_forward(state, packed)
    jax.block_until_ready((mean, log_std))

    ref_mean, ref_log_std = reference_forward(state, params)
    assert mean.shape == (BATCH, ACTION_DIM)
    assert log_std.shape == (BATCH, ACTION_DIM)
    assert jnp.allclose(mean, ref_mean, atol=1e-5, rtol=1e-5)
    assert jnp.allclose(log_std, ref_log_std, atol=1e-5, rtol=1e-5)

    # Medium batch (pads to 512 lanes, single 512-wide tile).
    s300 = jax.random.normal(jax.random.PRNGKey(1), (300, STATE_DIM), jnp.float32)
    m2, l2 = policy_forward(s300, packed)
    jax.block_until_ready((m2, l2))
    rm2, rl2 = reference_forward(s300, params)
    assert jnp.allclose(m2, rm2, atol=1e-5, rtol=1e-5)
    assert jnp.allclose(l2, rl2, atol=1e-5, rtol=1e-5)

    # Larger batch (pads to 1024 -> 2 parallel grid steps of 512 lanes).
    s1000 = jax.random.normal(jax.random.PRNGKey(2), (1000, STATE_DIM), jnp.float32)
    m3, l3 = policy_forward(s1000, packed)
    jax.block_until_ready((m3, l3))
    rm3, rl3 = reference_forward(s1000, params)
    assert jnp.allclose(m3, rm3, atol=1e-5, rtol=1e-5)
    assert jnp.allclose(l3, rl3, atol=1e-5, rtol=1e-5)

    print("KERNEL_OK")
</pallas_src>

<mosaic_0001>
module attributes {stable_mosaic.version = 11 : i64} {
  func.func @_policy_kernel(%arg0: i32, %arg1: memref<8x128xf32, #tpu.memory_space<vmem>>, %arg2: memref<136x32xf32, #tpu.memory_space<vmem>>, %arg3: memref<8x128xf32, #tpu.memory_space<vmem>>) attributes {dimension_semantics = [#tpu.dimension_semantics<parallel>], iteration_bounds = array<i64: 1>, scalar_prefetch = 0 : i64, scratch_operands = 0 : i64, tpu.core_type = #tpu.core_type<tc>, window_params = [{transform_indices = @transform_0, window_bounds = array<i64: 8, 128>}, {pipeline_mode = #tpu.pipeline_mode<synchronous>, transform_indices = @transform_1, window_bounds = array<i64: 136, 32>}, {transform_indices = @transform_2, window_bounds = array<i64: 8, 128>}]} {
    %c0 = arith.constant 0 : index
    %c0_0 = arith.constant 0 : index
    %0 = vector.load %arg1[%c0, %c0_0] : memref<8x128xf32, #tpu.memory_space<vmem>>, vector<8x128xf32>
    %c0_1 = arith.constant 0 : index
    %c0_2 = arith.constant 0 : index
    %1 = vector.load %arg2[%c0_1, %c0_2] : memref<136x32xf32, #tpu.memory_space<vmem>>, vector<32x8xf32>
    %c104 = arith.constant 104 : index
    %c0_3 = arith.constant 0 : index
    %2 = vector.load %arg2[%c104, %c0_3] : memref<136x32xf32, #tpu.memory_space<vmem>>, vector<32x1xf32>
    %cst = arith.constant dense<0.000000e+00> : vector<32x128xf32>
    %3 = tpu.matmul %1, %0, %cst {dimension_numbers = #tpu.dot_dimension_numbers<[1], [0], [0], [1], [0, 0, 1, 1], [], []>} : vector<32x8xf32>, vector<8x128xf32>, vector<32x128xf32> -> vector<32x128xf32>
    %4 = vector.broadcast %2 : vector<32x1xf32> to vector<32x128xf32>
    %5 = arith.addf %3, %4 : vector<32x128xf32>
    %cst_4 = arith.constant 0.000000e+00 : f32
    %6 = vector.broadcast %cst_4 : f32 to vector<32x128xf32>
    %7 = arith.maximumf %5, %6 : vector<32x128xf32>
    %c32 = arith.constant 32 : index
    %c0_5 = arith.constant 0 : index
    %8 = vector.load %arg2[%c32, %c0_5] : memref<136x32xf32, #tpu.memory_space<vmem>>, vector<32x32xf32>
    %c104_6 = arith.constant 104 : index
    %c1 = arith.constant 1 : index
    %9 = vector.load %arg2[%c104_6, %c1] : memref<136x32xf32, #tpu.memory_space<vmem>>, vector<32x1xf32>
    %cst_7 = arith.constant dense<0.000000e+00> : vector<32x128xf32>
    %10 = tpu.matmul %8, %7, %cst_7 {dimension_numbers = #tpu.dot_dimension_numbers<[1], [0], [0], [1], [0, 0, 1, 1], [], []>} : vector<32x32xf32>, vector<32x128xf32>, vector<32x128xf32> -> vector<32x128xf32>
    %11 = vector.broadcast %9 : vector<32x1xf32> to vector<32x128xf32>
    %12 = arith.addf %10, %11 : vector<32x128xf32>
    %cst_8 = arith.constant 0.000000e+00 : f32
    %13 = vector.broadcast %cst_8 : f32 to vector<32x128xf32>
    %14 = arith.maximumf %12, %13 : vector<32x128xf32>
    %c64 = arith.constant 64 : index
    %c0_9 = arith.constant 0 : index
    %15 = vector.load %arg2[%c64, %c0_9] : memref<136x32xf32, #tpu.memory_space<vmem>>, vector<32x32xf32>
    %c104_10 = arith.constant 104 : index
    %c2 = arith.constant 2 : index
    %16 = vector.load %arg2[%c104_10, %c2] : memref<136x32xf32, #tpu.memory_space<vmem>>, vector<32x1xf32>
    %cst_11 = arith.constant dense<0.000000e+00> : vector<32x128xf32>
    %17 = tpu.matmul %15, %14, %cst_11 {dimension_numbers = #tpu.dot_dimension_numbers<[1], [0], [0], [1], [0, 0, 1, 1], [], []>} : vector<32x32xf32>, vector<32x128xf32>, vector<32x128xf32> -> vector<32x128xf32>
    %18 = vector.broadcast %16 : vector<32x1xf32> to vector<32x128xf32>
    %19 = arith.addf %17, %18 : vector<32x128xf32>
    %cst_12 = arith.constant 0.000000e+00 : f32
    %20 = vector.broadcast %cst_12 : f32 to vector<32x128xf32>
    %21 = arith.maximumf %19, %20 : vector<32x128xf32>
    %c96 = arith.constant 96 : index
    %c0_13 = arith.constant 0 : index
    %22 = vector.load %arg2[%c96, %c0_13] : memref<136x32xf32, #tpu.memory_space<vmem>>, vector<8x32xf32>
    %c104_14 = arith.constant 104 : index
    %c3 = arith.constant 3 : index
    %23 = vector.load %arg2[%c104_14, %c3] : memref<136x32xf32, #tpu.memory_space<vmem>>, vector<8x1xf32>
    %cst_15 = arith.constant dense<0.000000e+00> : vector<8x128xf32>
    %24 = tpu.matmul %22, %21, %cst_15 {dimension_numbers = #tpu.dot_dimension_numbers<[1], [0], [0], [1], [0, 0, 1, 1], [], []>} : vector<8x32xf32>, vector<32x128xf32>, vector<8x128xf32> -> vector<8x128xf32>
    %25 = vector.broadcast %23 : vector<8x1xf32> to vector<8x128xf32>
    %26 = arith.addf %24, %25 : vector<8x128xf32>
    %27 = tpu.iota {dimensions = array<i32: 0>} : vector<8x1xi32>
    %c4_i32 = arith.constant 4 : i32
    %28 = vector.broadcast %c4_i32 : i32 to vector<8x1xi32>
    %29 = arith.cmpi sge, %27, %28 : vector<8x1xi32>
    %cst_16 = arith.constant -2.000000e+01 : f32
    %cst_17 = arith.constant 0xFF800000 : f32
    %30 = vector.broadcast %cst_16 : f32 to vector<8x1xf32>
    %31 = vector.broadcast %cst_17 : f32 to vector<8x1xf32>
    %32 = arith.select %29, %30, %31 : vector<8x1xi1>, vector<8x1xf32>
    %c4_i32_18 = arith.constant 4 : i32
    %33 = vector.broadcast %c4_i32_18 : i32 to vector<8x1xi32>
    %34 = arith.cmpi sge, %27, %33 : vector<8x1xi32>
    %cst_19 = arith.constant 2.000000e+00 : f32
    %cst_20 = arith.constant 0x7F800000 : f32
    %35 = vector.broadcast %cst_19 : f32 to vector<8x1xf32>
    %36 = vector.broadcast %cst_20 : f32 to vector<8x1xf32>
    %37 = arith.select %34, %35, %36 : vector<8x1xi1>, vector<8x1xf32>
    %38 = vector.broadcast %32 : vector<8x1xf32> to vector<8x128xf32>
    %39 = arith.maximumf %26, %38 : vector<8x128xf32>
    %40 = vector.broadcast %37 : vector<8x1xf32> to vector<8x128xf32>
    %41 = arith.minimumf %39, %40 : vector<8x128xf32>
    %c0_21 = arith.constant 0 : index
    %c0_22 = arith.constant 0 : index
    %42 = vector.load %arg3[%c0_21, %c0_22] : memref<8x128xf32, #tpu.memory_space<vmem>>, vector<8x128xf32>
    tpu.vector_store %arg3[%c0_21, %c0_22], %41 {strides = array<i32>} : memref<8x128xf32, #tpu.memory_space<vmem>>, vector<8x128xf32>,
    return
  }
  func.func @transform_0(%arg0: i32) -> (i32, i32) {
    %c0_i32 = arith.constant 0 : i32
    %c0_i32_0 = arith.constant 0 : i32
    return %c0_i32, %arg0 : i32, i32
  }
  func.func @transform_1(%arg0: i32) -> (i32, i32) {
    %c0_i32 = arith.constant 0 : i32
    %c0_i32_0 = arith.constant 0 : i32
    %c0_i32_1 = arith.constant 0 : i32
    return %c0_i32, %c0_i32_0 : i32, i32
  }
  func.func @transform_2(%arg0: i32) -> (i32, i32) {
    %c0_i32 = arith.constant 0 : i32
    %c0_i32_0 = arith.constant 0 : i32
    return %c0_i32, %arg0 : i32, i32
  }
}

</mosaic_0001>

<bundles_post_ra>
// kernel: policy_forward.1
= control target key start
LH: loop header
LB: loop body
LE: loop exit
PB: predicated region body
PF: predicated region fallthrough
CT: control target
= control target key end

     0   :  { %vm40_vm0 = vcmask 64512   ;;  %v296_v2 = vmov 0   ;;  %v297_v13 = vmov 1   ;;  %vm106_vm1 = vcmask 261120   ;;  %s398_s0 = inlined_call_operand.vmem [shape: f32[8,128], index: 0, kind: input, shape index: {}]   ;;  %s399_s1 = inlined_call_operand.vmem [shape: f32[136,32], index: 1, kind: input, shape index: {}]   ;;  %s400_s2 = inlined_call_operand.vmem [shape: f32[8,128], index: 2, kind: output, shape index: {}]  }
   0x1   :  { %v11_v0 = vld [vmem:[%s398_s0] sm:$0xff]  ;;  %287 = vset.pattern.permute.xlu1 %v296_v2  ;;  %v326_v3 = vld [vmem:[%s399_s1 + $0x70] sm:$0xff]  ;;  %286 = vset.pattern.permute.xlu0 %v296_v2  ;;  %v336_v5 = vld [vmem:[%s399_s1 + $0x68] sm:$0xff]  ;;  %v298_v32 = vmov 2   ;;  %v299_v52 = vmov 3  }
   0x2   :  { %v12_v1 = vld [vmem:[%s399_s1] sm:$0xff]  ;;  %68 = vmatpush.msra.mxu0 %v11_v0  ;;  %27 = vperm.xlu1 %287, %v326_v3   ;;  %v13_v6 = vld [vmem:[%s399_s1 + $0x8] sm:$0xff]  ;;  %v18_v7 = vld [vmem:[%s399_s1 + $0x78] sm:$0xff] }
   0x3   :  { %259 = vmatmul.msk.f32.vlgmr.msra.gmra.mxu0 %vm40_vm0, %v12_v1  ;;  %v19_v4 = vld [vmem:[%s399_s1 + $0x80] sm:$0xff]  ;;  %v14_v8 = vld [vmem:[%s399_s1 + $0x10] sm:$0xff]  ;;  %v15_v9 = vld [vmem:[%s399_s1 + $0x18] sm:$0xff]  ;;  %288 = vset.pattern.permute.xlu2 %v297_v13 }
   0x4   :  { %37 = vperm.xlu0 %286, %v19_v4   ;;  %103 = vperm.xlu2 %288, %v19_v4   ;;  %v86_v27 = vld [vmem:[%s399_s1 + $0x20] sm:$0xff]  ;;  %v89_v28 = vld [vmem:[%s399_s1 + $0x38] sm:$0xff]  ;;  %v87_v29 = vld [vmem:[%s399_s1 + $0x28] sm:$0xff] }
   0x5   :  { %v88_v30 = vld [vmem:[%s399_s1 + $0x30] sm:$0xff]  ;;  %v152_v48 = vld [vmem:[%s399_s1 + $0x40] sm:$0xff]  ;;  %v155_v49 = vld [vmem:[%s399_s1 + $0x58] sm:$0xff] }
   0x6   :  { %v153_v50 = vld [vmem:[%s399_s1 + $0x48] sm:$0xff]  ;;  %v154_v51 = vld [vmem:[%s399_s1 + $0x50] sm:$0xff] }
   0xa   :  { %22 = vperm.xlu1 %287, %v336_v5  }
   0xb   :  { %260 = vmatmul.msk.f32.gmra.mxu0 %vm40_vm0, %v13_v6  ;;  %v247_v6 = vlaneseq }
   0xc   :  { %32 = vperm.xlu0 %286, %v18_v7   ;;  %99 = vperm.xlu2 %288, %v18_v7  }
  0x12   :  { %290 = vset.pattern.permute.xlu1 %v297_v13 }
  0x13   :  { %261 = vmatmul.msk.f32.gmra.mxu0 %vm40_vm0, %v14_v8  ;;  %91 = vperm.xlu1 %290, %v336_v5  }
  0x14   :  { %289 = vset.pattern.permute.xlu0 %v297_v13  ;;  %291 = vset.pattern.permute.xlu2 %v298_v32  ;;  %v301_v13 = vmov inf  }
  0x15   :  { %95 = vperm.xlu0 %289, %v326_v3   ;;  %169 = vperm.xlu2 %291, %v19_v4  }
  0x1b   :  { %262 = vmatmul.msk.f32.gmra.mxu0 %vm40_vm0, %v15_v9  ;;  %292 = vset.pattern.permute.xlu1 %v298_v32 }
  0x1c   :  { %165 = vperm.xlu1 %292, %v18_v7   ;;  %v248_v7 = vshrl.u32 %v247_v6, 7 }
  0x1d   :  { %293 = vset.pattern.permute.xlu0 %v298_v32  ;;  %161 = vperm.xlu2 %291, %v326_v3  }
  0x1e   :  { %157 = vperm.xlu0 %293, %v336_v5   ;;  %vm249_vm2 = vcmp.ge.s32.totalorder %v248_v7, 4 }
  0x24   :  { %294 = vset.pattern.permute.xlu1 %v299_v52 }
  0x25   :  { %221 = vperm.xlu1 %294, %v336_v5   ;;  %v217_v5 = vld [vmem:[%s399_s1 + $0x60] sm:$0xff] }
  0x26   :  { %295 = vset.pattern.permute.xlu0 %v299_v52 }
  0x5e   :  { %v104_v33 = vpop.permute.xlu2 %103 }
  0x66   :  { %v100_v40 = vpop.permute.xlu2 %99 }
  0x6f   :  { %v170_v53 = vpop.permute.xlu2 %169 }
  0x74   :  { %v28_v14 = vpop.permute.xlu1 %27 }
  0x76   :  { %v38_v12 = vpop.permute.xlu0 %37 }
  0x77   :  { %v162_v59 = vpop.permute.xlu2 %161 }
  0x7c   :  { %v23_v20 = vpop.permute.xlu1 %22 }
  0x7e   :  { %v33_v16 = vpop.permute.xlu0 %32 }
  0x80   :  { %v70_v10 = vpop.f32.mrf.mxu0 }
  0x81   :  { %v71_v23 = vadd.f32 %v70_v10, %v23_v20  ;;  %v300_v10 = vmov -inf  }
  0x83   :  { %v82_v26 = vmax.f32 %v71_v23, 0.0 }
  0x85   :  { %v92_v39 = vpop.permute.xlu1 %91 }
  0x87   :  { %v96_v38 = vpop.permute.xlu0 %95 }
  0x88   :  { %v73_v11 = vpop.f32.mrf.mxu0 }
  0x89   :  { %v74_v21 = vadd.f32 %v73_v11, %v28_v14  ;;  %v250_v11 = vsel %vm249_vm2, -20.0, %v300_v10  ;;  %v251_v14 = vsel %vm249_vm2, 2.0, %v301_v13 }
  0x8b   :  { %v83_v25 = vmax.f32 %v74_v21, 0.0 }
  0x8e   :  { %v166_v60 = vpop.permute.xlu1 %165 }
  0x90   :  { %v76_v15 = vpop.f32.mrf.mxu0  ;;  %v158_v61 = vpop.permute.xlu0 %157 }
  0x91   :  { %v77_v18 = vadd.f32 %v76_v15, %v33_v16 }
  0x93   :  { %v84_v24 = vmax.f32 %v77_v18, 0.0 }
  0x97   :  { %v222_v8 = vpop.permute.xlu1 %221 }
  0x98   :  { %v79_v17 = vpop.f32.mrf.mxu0 }
  0x99   :  { %v80_v19 = vadd.f32 %v79_v17, %v38_v12 }
  0x9b   :  { %v85_v22 = vmax.f32 %v80_v19, 0.0 }
  0x9d   :  { %131 = vmatpush.msra.mxu1 %v85_v22  ;;  %272 = vmatpush.msra.mxu3 %v85_v22 }
  0x9f   :  { %132 = vmatpush.msra.mxu1 %v84_v24  ;;  %273 = vmatpush.msra.mxu3 %v84_v24 }
  0xa1   :  { %133 = vmatpush.msra.mxu1 %v83_v25  ;;  %274 = vmatpush.msra.mxu3 %v83_v25 }
  0xa3   :  { %134 = vmatpush.msra.mxu1 %v82_v26  ;;  %275 = vmatpush.msra.mxu3 %v82_v26 }
  0xa4   :  { %263 = vmatmul.msk.f32.vlgmr.msra.gmra.mxu1 %vm106_vm1, %v86_v27  ;;  %266 = vmatmul.msk.f32.vlgmr.msra.gmra.mxu3 %vm106_vm1, %v89_v28 }
  0xac   :  { %264 = vmatmul.msk.f32.gmra.mxu1 %vm106_vm1, %v87_v29 }
  0xb4   :  { %265 = vmatmul.msk.f32.gmra.mxu1 %vm106_vm1, %v88_v30 }
 0x121   :  { %v136_v31 = vpop.f32.mrf.mxu1 }
 0x122   :  { %v137_v44 = vadd.f32 %v136_v31, %v92_v39 }
 0x124   :  { %v148_v47 = vmax.f32 %v137_v44, 0.0 }
 0x127   :  { %v145_v34 = vpop.f32.mrf.mxu3 }
 0x128   :  { %v146_v35 = vadd.f32 %v145_v34, %v104_v33 }
 0x129   :  { %v139_v36 = vpop.f32.mrf.mxu1 }
 0x12a   :  { %v151_v37 = vmax.f32 %v146_v35, 0.0  ;;  %v140_v42 = vadd.f32 %v139_v36, %v96_v38 }
 0x12c   :  { %196 = vmatpush.msra.mxu2 %v151_v37  ;;  %276 = vmatpush.msrb.mxu3 %v151_v37  ;;  %v149_v46 = vmax.f32 %v140_v42, 0.0 }
 0x131   :  { %v142_v41 = vpop.f32.mrf.mxu1 }
 0x132   :  { %v143_v43 = vadd.f32 %v142_v41, %v100_v40 }
 0x134   :  { %v150_v45 = vmax.f32 %v143_v43, 0.0 }
 0x136   :  { %197 = vmatpush.msra.mxu2 %v150_v45  ;;  %277 = vmatpush.msrb.mxu3 %v150_v45 }
 0x138   :  { %198 = vmatpush.msra.mxu2 %v149_v46  ;;  %278 = vmatpush.msrb.mxu3 %v149_v46 }
 0x13a   :  { %199 = vmatpush.msra.mxu2 %v148_v47  ;;  %279 = vmatpush.msrb.mxu3 %v148_v47 }
 0x13b   :  { %267 = vmatmul.msk.f32.vlgmr.msra.gmra.mxu2 %vm106_vm1, %v152_v48  ;;  %270 = vmatmul.msk.f32.vlgmr.msrb.gmra.mxu3 %vm106_vm1, %v155_v49 }
 0x143   :  { %268 = vmatmul.msk.f32.gmra.mxu2 %vm106_vm1, %v153_v50 }
 0x14b   :  { %269 = vmatmul.msk.f32.gmra.mxu2 %vm106_vm1, %v154_v51 }
 0x1be   :  { %v201_v54 = vpop.f32.mrf.mxu2  ;;  %v210_v55 = vpop.f32.mrf.mxu3 }
 0x1bf   :  { %v211_v56 = vadd.f32 %v210_v55, %v170_v53  ;;  %v202_v1 = vadd.f32 %v201_v54, %v158_v61 }
 0x1c1   :  { %v216_v57 = vmax.f32 %v211_v56, 0.0  ;;  %v213_v4 = vmax.f32 %v202_v1, 0.0 }
 0x1c3   :  { %239 = vmatpush.msra.mxu3 %v216_v57 }
 0x1c6   :  { %v204_v58 = vpop.f32.mrf.mxu2 }
 0x1c7   :  { %v205_v63 = vadd.f32 %v204_v58, %v162_v59 }
 0x1c9   :  { %v214_v3 = vmax.f32 %v205_v63, 0.0 }
 0x1ce   :  { %v207_v62 = vpop.f32.mrf.mxu2 }
 0x1cf   :  { %v208_v0 = vadd.f32 %v207_v62, %v166_v60 }
 0x1d1   :  { %v215_v2 = vmax.f32 %v208_v0, 0.0 }
 0x1d3   :  { %240 = vmatpush.msra.mxu3 %v215_v2 }
 0x1d5   :  { %241 = vmatpush.msra.mxu3 %v214_v3 }
 0x1d7   :  { %242 = vmatpush.msra.mxu3 %v213_v4 }
 0x1d8   :  { %271 = vmatmul.msk.f32.vlgmr.msra.gmra.mxu3 %vm106_vm1, %v217_v5 }
 0x25b   :  { %v244_v9 = vpop.f32.mrf.mxu3 }
 0x25c   :  { %v245_v12 = vadd.f32 %v244_v9, %v222_v8 }
 0x25e   :  { %v252_v15 = vmax.f32 %v245_v12, %v250_v11 }
 0x260   :  { %v253_v16 = vmin.f32 %v252_v15, %v251_v14 }
 0x262   :  { %254 = vst [vmem:[%s400_s2] sm:$0xff] %v253_v16 }

</bundles_post_ra>
